<compile_context>
chip_gen: v7x
topology: tpu7x:2x2x1
jax: 0.10.0
libtpu: 0.0.40
codegen_flags: <defaults>
</compile_context>

<pallas_src>
import jax
import jax.numpy as jnp
from jax.experimental import pallas as pl
from jax.experimental.pallas import tpu as pltpu


def _copy_kernel(x_ref, o_ref):
    # Plain full-tile, lane-dense copy.
    o_ref[...] = x_ref[...]


def _pick_lanes(total):
    """Largest lane-dense width (multiple of 128) that divides the flat size."""
    candidates = (4096, 2048, 1024, 512, 256, 128)
    for lanes in candidates:               # prefer >= 8 rows (full sublane tiles)
        if total % lanes == 0 and total // lanes >= 8:
            return lanes
    for lanes in candidates:               # otherwise any divisor
        if total % lanes == 0:
            return lanes
    return None


def nn_squeeze_forward(x, use_pallas_copy=False):
    """Pallas equivalent of `torch.squeeze(x)` (remove all size-1 dims)."""
    in_shape = x.shape
    squeeze_axes = tuple(i for i, d in enumerate(in_shape) if d == 1)
    out_shape = tuple(d for d in in_shape if d != 1)

    if out_shape == in_shape:
        return x  # nothing to squeeze

    if not use_pallas_copy or x.size == 0 or len(out_shape) < 1:
        # Zero-copy metadata relabel: nothing a kernel does can beat a no-op.
        return jax.lax.squeeze(x, squeeze_axes)

    total = x.size
    itemsize = jnp.dtype(x.dtype).itemsize
    lanes = _pick_lanes(total)
    if lanes is None:
        # TODO(synk): flat size not a multiple of 128 -> a kernel would emit
        # masked partial stores; use the zero-copy relabel instead.
        return jax.lax.squeeze(x, squeeze_axes)

    rows = total // lanes

    # Sublane alignment by dtype packing: 8 (4B), 16 (2B), 32 (1B).
    align = max(8, 32 // itemsize)

    # Per-buffer tile budget: 4 MiB -> (1 in + 1 out) x 2 pipeline buffers
    # = 16 MiB, inside every generation's scoped-VMEM budget (incl. v5e).
    tile_budget_bytes = 4 * 1024 * 1024
    max_rows = max(align, (tile_budget_bytes // (lanes * itemsize)) // align * align)

    if rows <= max_rows:
        tile_rows = rows                    # full extent (always a legal block)
    else:
        tile_rows = max_rows                # multiple of `align` by construction
    n_tiles = pl.cdiv(rows, tile_rows)

    # Balance the grid across the two v7x TensorCores (harmless on v5e/v6e).
    if n_tiles == 1 and rows >= 2 * align:
        tile_rows = ((rows // 2 + align - 1) // align) * align
        n_tiles = pl.cdiv(rows, tile_rows)
    elif n_tiles > 1 and n_tiles % 2 == 1:
        cand = max(align, ((pl.cdiv(rows, n_tiles + 1) + align - 1) // align) * align)
        if pl.cdiv(rows, cand) % 2 == 0:
            tile_rows = cand
            n_tiles = pl.cdiv(rows, tile_rows)

    x2d = x.reshape(rows, lanes)            # free for contiguous row-major data

    out2d = pl.pallas_call(
        _copy_kernel,
        out_shape=jax.ShapeDtypeStruct((rows, lanes), x.dtype),
        grid=(n_tiles,),
        in_specs=[pl.BlockSpec((tile_rows, lanes), lambda i: (i, 0))],
        out_specs=pl.BlockSpec((tile_rows, lanes), lambda i: (i, 0)),
        compiler_params=pltpu.CompilerParams(
            dimension_semantics=("parallel",),
            vmem_limit_bytes=32 * 1024 * 1024,
        ),
        cost_estimate=pl.CostEstimate(
            flops=0, transcendentals=0,
            bytes_accessed=2 * total * itemsize),
    )(x2d)

    return out2d.reshape(out_shape)


if __name__ == "__main__":
    key = jax.random.PRNGKey(0)
    k1, k2, k3 = jax.random.split(key, 3)

    # 1) Typical case: batch of feature maps with a singleton dim (Pallas copy).
    x = jax.random.normal(k1, (2, 1, 16, 128), dtype=jnp.float32)
    out = jax.block_until_ready(nn_squeeze_forward(x, use_pallas_copy=True))
    ref = jnp.squeeze(x)
    assert out.shape == ref.shape == (2, 16, 128)
    assert jnp.array_equal(out, ref), "mismatch vs jnp.squeeze reference"

    # 2) Leading singleton only (single-tile Pallas copy).
    x2 = jax.random.normal(k2, (1, 8, 128), dtype=jnp.float32)
    out2 = jax.block_until_ready(nn_squeeze_forward(x2, use_pallas_copy=True))
    assert out2.shape == (8, 128)
    assert jnp.array_equal(out2, jnp.squeeze(x2)), "mismatch vs jnp.squeeze reference"

    # 3) bf16, multi-tile even grid (exercises dtype alignment + megacore split).
    x3 = jax.random.normal(k3, (4, 1, 128, 256), dtype=jnp.bfloat16)
    out3 = jax.block_until_ready(nn_squeeze_forward(x3, use_pallas_copy=True))
    assert out3.shape == (4, 128, 256)
    assert jnp.array_equal(out3, jnp.squeeze(x3)), "mismatch vs jnp.squeeze reference"

    # 4) Size not a multiple of 128 -> zero-copy fallback (still correct).
    x4 = jax.random.normal(key, (2, 1, 3, 5), dtype=jnp.float32)
    out4 = jax.block_until_ready(nn_squeeze_forward(x4, use_pallas_copy=True))
    assert out4.shape == (2, 3, 5)
    assert jnp.array_equal(out4, jnp.squeeze(x4)), "mismatch vs jnp.squeeze reference"

    # 5) Default (perf-optimal) path: zero-copy metadata relabel.
    out5 = jax.block_until_ready(nn_squeeze_forward(x))
    assert out5.shape == (2, 16, 128)
    assert jnp.array_equal(out5, ref), "mismatch vs jnp.squeeze reference"

    # 6) Nothing to squeeze -> input returned unchanged.
    x6 = jax.random.normal(key, (2, 4), dtype=jnp.float32)
    assert nn_squeeze_forward(x6, use_pallas_copy=True) is x6

    print("KERNEL_OK")
</pallas_src>

<mosaic_0001>
module attributes {stable_mosaic.version = 11 : i64} {
  func.func @_copy_kernel(%arg0: i32, %arg1: memref<8x512xf32, #tpu.memory_space<vmem>>, %arg2: memref<8x512xf32, #tpu.memory_space<vmem>>) attributes {dimension_semantics = [#tpu.dimension_semantics<parallel>], iteration_bounds = array<i64: 1>, scalar_prefetch = 0 : i64, scratch_operands = 0 : i64, tpu.core_type = #tpu.core_type<tc>, window_params = [{transform_indices = @transform_0, window_bounds = array<i64: 8, 512>}, {transform_indices = @transform_1, window_bounds = array<i64: 8, 512>}]} {
    %c0 = arith.constant 0 : index
    %c0_0 = arith.constant 0 : index
    %0 = vector.load %arg1[%c0, %c0_0] : memref<8x512xf32, #tpu.memory_space<vmem>>, vector<8x512xf32>
    %c0_1 = arith.constant 0 : index
    %c0_2 = arith.constant 0 : index
    %1 = vector.load %arg2[%c0_1, %c0_2] : memref<8x512xf32, #tpu.memory_space<vmem>>, vector<8x512xf32>
    tpu.vector_store %arg2[%c0_1, %c0_2], %0 {strides = array<i32>} : memref<8x512xf32, #tpu.memory_space<vmem>>, vector<8x512xf32>,
    return
  }
  func.func @transform_0(%arg0: i32) -> (i32, i32) {
    %c0_i32 = arith.constant 0 : i32
    %c0_i32_0 = arith.constant 0 : i32
    return %arg0, %c0_i32 : i32, i32
  }
  func.func @transform_1(%arg0: i32) -> (i32, i32) {
    %c0_i32 = arith.constant 0 : i32
    %c0_i32_0 = arith.constant 0 : i32
    return %arg0, %c0_i32 : i32, i32
  }
}

</mosaic_0001>

<bundles_post_ra>
// kernel: tpu_custom_call.1
= control target key start
LH: loop header
LB: loop body
LE: loop exit
PB: predicated region body
PF: predicated region fallthrough
CT: control target
= control target key end

     0   :  { %6 = vsyncpa [#allocation3], 0  ;;  %s130_s0 = inlined_call_operand.hbm [shape: f32[8,512], index: 0, kind: input, shape index: {}]   ;;  %s131_s1 = inlined_call_operand.hbm [shape: f32[8,512], index: 1, kind: output, shape index: {}]  }
   0x1   :  { %7 = vsyncpa [#allocation4], 0  ;;  %s94_s6 = smov [#allocation2]   ;;  %s46_s10 = scalar_lea.hbm %s130_s0, 512 }
   0x2   :  { %s14_s7 = sshll.u32 %s94_s6, 4  ;;  %p47_p0 = scmp.ne.s32.totalorder %s130_s0, %s46_s10  ;;  %s15_s7 = int_to_ptr.vmem [resolvable:$true] %s14_s7 }
   0x3   :  { %p50_p1 = scmp.lt.u32.totalorder %s46_s10, %s130_s0 }
   0x5   :  { %p52_p2 = pnand %p50_p1, %p47_p0 }
   0x7   :  { %55 = shalt.err (!%p52_p2)
}
   0x8   :  { %s56_s15 = scalar_lea.vmem %s15_s7, 512  ;;  %p61_p4 = scmp.lt.s32.totalorder %s15_s7, %s15_s7 }
   0x9   :  { %p57_p3 = scmp.ne.s32.totalorder %s15_s7, %s56_s15  ;;  %p62_p5 = scmp.lt.s32.totalorder %s56_s15, %s56_s15 }
   0xb   :  { %p63_p6 = por %p62_p5, %p61_p4 }
   0xd   :  { %p64_p7 = pnand %p63_p6, %p57_p3 }
   0xf   :  { %67 = shalt.err (!%p64_p7)
}
  0x10   :  { %17 = dma.hbm_to_vmem [thread:$0]  %s130_s0, 512, %s15_s7, [#allocation3]  }
  0x11   :  { %90 = dma.done.wait [#allocation3], 512  }
  0x12   :  { %91 = vsyncadd [#allocation3], 4294966784  ;;  %s95_s18 = smov [#allocation5]   ;;  %v21_v0 = vld [vmem:[#allocation2] sm:$0xff]  ;;  %v22_v1 = vld [vmem:[#allocation2 + $0x8] sm:$0xff] }
  0x13   :  { %s35_s19 = sshll.u32 %s95_s18, 4  ;;  %v23_v2 = vld [vmem:[#allocation2 + $0x10] sm:$0xff]  ;;  %25 = vst [vmem:[#allocation5] sm:$0xff] %v21_v0  ;;  %26 = vst [vmem:[#allocation5 + $0x8] sm:$0xff] %v22_v1  ;;  %v24_v3 = vld [vmem:[#allocation2 + $0x18] sm:$0xff]  ;;  %s36_s19 = int_to_ptr.vmem [resolvable:$true] %s35_s19 }
  0x14   :  { %27 = vst [vmem:[#allocation5 + $0x10] sm:$0xff] %v23_v2  ;;  %28 = vst [vmem:[#allocation5 + $0x18] sm:$0xff] %v24_v3  ;;  %s68_s20 = scalar_lea.vmem %s36_s19, 512  ;;  %p73_p9 = scmp.lt.s32.totalorder %s36_s19, %s36_s19 }
  0x15   :  { %p69_p8 = scmp.ne.s32.totalorder %s36_s19, %s68_s20  ;;  %p74_p10 = scmp.lt.s32.totalorder %s68_s20, %s68_s20 }
  0x17   :  { %p75_p11 = por %p74_p10, %p73_p9 }
  0x19   :  { %p76_p12 = pnand %p75_p11, %p69_p8 }
  0x1b   :  { %79 = shalt.err (!%p76_p12)
}
  0x1c   :  { %s80_s22 = scalar_lea.hbm %s131_s1, 512 }
  0x1d   :  { %p81_p13 = scmp.ne.s32.totalorder %s131_s1, %s80_s22  ;;  %p84_p0 = scmp.lt.u32.totalorder %s80_s22, %s131_s1 }
  0x1f   :  { %p86_p1 = pnand %p84_p0, %p81_p13 }
  0x21   :  { %89 = shalt.err (!%p86_p1)
}
  0x22   :  { %38 = dma.vmem_to_hbm [thread:$0]  %s36_s19, 512, %s131_s1, [#allocation4]  }
  0x23   :  { %92 = dma.done.wait [#allocation4], 512  }
  0x24   :  { %93 = vsyncadd [#allocation4], 4294966784 }
  0x25   :  { %42 = vsyncpa [#allocation3], 1 }
  0x26   :  { %43 = vsyncpa [#allocation4], 1 }

</bundles_post_ra>
